<compile_context>
chip_gen: v5e
topology: v5e:2x2
jax: 0.10.0
libtpu: 0.0.40
codegen_flags: <defaults>
</compile_context>

<pallas_src>
import jax
import jax.numpy as jnp
from jax.experimental import pallas as pl
from jax.experimental.pallas import tpu as pltpu

_NEG_SLOPE = 0.01
_LANE_CANDIDATES = (4096, 2048, 1024, 512, 256, 128)
_TARGET_TILE_BYTES = 8 * 1024 * 1024       # per buffer; x4 (in+out, double-buffered) = 32 MiB
_VMEM_LIMIT_BYTES = 48 * 1024 * 1024       # explicit budget: > all scoped defaults, < v7x 64 MiB physical
_SINGLE_BLOCK_MAX_BYTES = 2 * 1024 * 1024  # below this, splitting overhead outweighs multi-core gain
_MIN_GRID_STEPS = 4                        # >= 2 TensorCores (v7x) * 2 so both cores stream + overlap


def _leaky_relu_kernel(x_ref, o_ref):
    # Pure VPU elementwise: out = where(x < 0, 0.01 * x, x)
    x = x_ref[...]
    o_ref[...] = jnp.where(x < 0, x * jnp.asarray(_NEG_SLOPE, x.dtype), x)


def _leaky_relu_jnp(x: jax.Array) -> jax.Array:
    # Fallback path (ragged / empty / non-float): fused XLA elementwise, zero extra copies.
    return jnp.where(x < 0, x * jnp.asarray(_NEG_SLOPE, x.dtype), x)


def _choose_lane_width(n: int, min_rows: int):
    """Widest lane-dense last dim dividing n, preferring >= min_rows rows (full packed vregs).

    Returns None if n is not a multiple of 128."""
    for w in _LANE_CANDIDATES:
        if n % w == 0 and (n // w) >= min_rows:
            return w
    for w in _LANE_CANDIDATES:
        if n % w == 0:
            return w
    return None


def leaky_relu_pallas(x: jax.Array, *, donate_input: bool = False) -> jax.Array:
    """Applies the module's forward (leaky ReLU, slope 0.01) via a Pallas TPU kernel."""
    orig_shape = x.shape
    dtype = x.dtype
    n = x.size

    if n == 0 or not jnp.issubdtype(dtype, jnp.floating):
        return _leaky_relu_jnp(x)

    itemsize = dtype.itemsize
    # Sublane packing: f32 -> 8 rows, bf16/f16 -> 16, int8/fp8 -> 32.
    sub_pack = max(8, 32 // itemsize)

    lane_w = _choose_lane_width(n, sub_pack)
    if lane_w is None:
        # Ragged size: a pad + post-slice would be ~3x the HBM traffic; plain XLA wins.
        return _leaky_relu_jnp(x)

    rows = n // lane_w
    bytes_per_row = lane_w * itemsize
    total_bytes = rows * bytes_per_row

    # Largest block (rows) fitting the per-buffer tile target, rounded to the packed sublane unit.
    target_rows = max(sub_pack, (_TARGET_TILE_BYTES // bytes_per_row) // sub_pack * sub_pack)

    if total_bytes <= _SINGLE_BLOCK_MAX_BYTES or rows <= sub_pack:
        # Genuinely small: single full-extent block (always layout-legal).
        block_rows = rows
    else:
        # Cap block size so the grid has >= _MIN_GRID_STEPS steps (both v7x TCs stream).
        cap = pl.cdiv(rows, _MIN_GRID_STEPS)
        block_rows = min(target_rows, cap)
        block_rows = max(sub_pack, (block_rows // sub_pack) * sub_pack)
        block_rows = min(block_rows, rows)

    x2d = x.reshape(rows, lane_w)
    grid = (pl.cdiv(rows, block_rows),)

    out2d = pl.pallas_call(
        _leaky_relu_kernel,
        out_shape=jax.ShapeDtypeStruct((rows, lane_w), dtype),
        grid_spec=pltpu.PrefetchScalarGridSpec(
            num_scalar_prefetch=0,
            grid=grid,
            in_specs=[pl.BlockSpec((block_rows, lane_w), lambda i: (i, 0))],
            out_specs=pl.BlockSpec((block_rows, lane_w), lambda i: (i, 0)),
        ),
        compiler_params=pltpu.CompilerParams(
            dimension_semantics=("parallel",),
            vmem_limit_bytes=_VMEM_LIMIT_BYTES,
        ),
        cost_estimate=pl.CostEstimate(
            flops=2 * n,
            transcendentals=0,
            bytes_accessed=2 * n * itemsize,
        ),
        # Only alias when the caller actually donates the input; otherwise XLA
        # would insert a defensive copy (extra HBM read+write).
        input_output_aliases={0: 0} if donate_input else {},
    )(x2d)

    return out2d.reshape(orig_shape)


if __name__ == "__main__":
    key = jax.random.PRNGKey(0)
    # NCHW input, small shape consistent with the image-processing miniproject.
    x = jax.random.normal(key, (2, 4, 16, 16), dtype=jnp.float32)

    y = leaky_relu_pallas(x)
    jax.block_until_ready(y)

    # Reference: the module's forward is where(x < 0, 0.01 * x, x).
    y_ref = jnp.where(x < 0, _NEG_SLOPE * x, x)
    assert y.shape == x.shape and y.dtype == x.dtype
    assert jnp.allclose(y, y_ref, atol=1e-7, rtol=1e-7)

    print("KERNEL_OK")
</pallas_src>

<mosaic_0001>
module attributes {stable_mosaic.version = 11 : i64} {
  func.func @_leaky_relu_kernel(%arg0: i32, %arg1: memref<8x256xf32, #tpu.memory_space<vmem>>, %arg2: memref<8x256xf32, #tpu.memory_space<vmem>>) attributes {dimension_semantics = [#tpu.dimension_semantics<parallel>], iteration_bounds = array<i64: 1>, scalar_prefetch = 0 : i64, scratch_operands = 0 : i64, tpu.core_type = #tpu.core_type<tc>, window_params = [{transform_indices = @transform_0, window_bounds = array<i64: 8, 256>}, {transform_indices = @transform_1, window_bounds = array<i64: 8, 256>}]} {
    %c0 = arith.constant 0 : index
    %c0_0 = arith.constant 0 : index
    %0 = vector.load %arg1[%c0, %c0_0] : memref<8x256xf32, #tpu.memory_space<vmem>>, vector<8x256xf32>
    %cst = arith.constant 0.000000e+00 : f32
    %1 = vector.broadcast %cst : f32 to vector<8x256xf32>
    %2 = arith.cmpf olt, %0, %1 : vector<8x256xf32>
    %cst_1 = arith.constant 0.00999999977 : f32
    %3 = vector.broadcast %cst_1 : f32 to vector<8x256xf32>
    %4 = arith.mulf %0, %3 : vector<8x256xf32>
    %5 = arith.select %2, %4, %0 : vector<8x256xi1>, vector<8x256xf32>
    %c0_2 = arith.constant 0 : index
    %c0_3 = arith.constant 0 : index
    %6 = vector.load %arg2[%c0_2, %c0_3] : memref<8x256xf32, #tpu.memory_space<vmem>>, vector<8x256xf32>
    tpu.vector_store %arg2[%c0_2, %c0_3], %5 {strides = array<i32>} : memref<8x256xf32, #tpu.memory_space<vmem>>, vector<8x256xf32>,
    return
  }
  func.func @transform_0(%arg0: i32) -> (i32, i32) {
    %c0_i32 = arith.constant 0 : i32
    %c0_i32_0 = arith.constant 0 : i32
    return %arg0, %c0_i32 : i32, i32
  }
  func.func @transform_1(%arg0: i32) -> (i32, i32) {
    %c0_i32 = arith.constant 0 : i32
    %c0_i32_0 = arith.constant 0 : i32
    return %arg0, %c0_i32 : i32, i32
  }
}

</mosaic_0001>

<bundles_post_ra>
// kernel: tpu_custom_call.1
= control target key start
LH: loop header
LB: loop body
LE: loop exit
PB: predicated region body
PF: predicated region fallthrough
CT: control target
= control target key end

     0   :  { %6 = vsyncpa [#allocation3], 0  ;;  %s122_s0 = inlined_call_operand.hbm [shape: f32[8,256], index: 0, kind: input, shape index: {}]   ;;  %s123_s1 = inlined_call_operand.hbm [shape: f32[8,256], index: 1, kind: output, shape index: {}]  }
   0x1   :  { %7 = vsyncpa [#allocation4], 0  ;;  %s13_s8 = sshll.u32 %s122_s0, 4  ;;  %s104_s9 = smov [#allocation2]   ;;  %s14_s8 = int_to_ptr.hbm [resolvable:$true] %s13_s8 }
   0x2   :  { %s15_s10 = sshll.u32 %s104_s9, 4  ;;  %s16_s10 = int_to_ptr.vmem [resolvable:$true] %s15_s10 }
   0x3   :  { %18 = dma.hbm_to_vmem [thread:$0]  %s14_s8, 256, %s16_s10, [#allocation3]  }
   0x4   :  { %100 = dma.done.wait [#allocation3], 256  }
   0x5   :  { %101 = vsyncadd [#allocation3], 4294967040  ;;  %v23_v0 = vld [vmem:[#allocation2] sm:$0xff]  ;;  %v24_v1 = vld [vmem:[#allocation2 + $0x8] sm:$0xff]  ;;  %s105_s11 = smov [#allocation5]   ;;  %s40_s15 = sshll.u32 %s123_s1, 4  ;;  %s41_s15 = int_to_ptr.hbm [resolvable:$true] %s40_s15 }
   0x6   :  { %s38_s12 = sshll.u32 %s105_s11, 4  ;;  %vm25_vm0 = vcmp.lt.f32.partialorder %v23_v0, 0.0  ;;  %v27_v2 = vmul.f32 0.01, %v23_v0  ;;  %vm26_vm1 = vcmp.lt.f32.partialorder %v24_v1, 0.0  ;;  %s39_s12 = int_to_ptr.vmem [resolvable:$true] %s38_s12 }
   0x7   :  { %v28_v3 = vmul.f32 0.01, %v24_v1 }
   0x8   :  { %v29_v4 = vsel %vm25_vm0, %v27_v2, %v23_v0 }
   0x9   :  { %v30_v5 = vsel %vm26_vm1, %v28_v3, %v24_v1  ;;  %31 = vst [vmem:[#allocation5] sm:$0xff] %v29_v4 }
   0xa   :  { %32 = vst [vmem:[#allocation5 + $0x8] sm:$0xff] %v30_v5 }
   0xb   :  { %43 = dma.vmem_to_hbm [thread:$0]  %s39_s12, 256, %s41_s15, [#allocation4]  }
   0xc   :  { %102 = dma.done.wait [#allocation4], 256  }
   0xd   :  { %103 = vsyncadd [#allocation4], 4294967040 }
   0xe   :  { %48 = vsyncpa [#allocation3], 1 }
   0xf   :  { %49 = vsyncpa [#allocation4], 1 }

</bundles_post_ra>
